<compile_context>
chip_gen: v7x
topology: tpu7x:2x2x1
jax: 0.10.0
libtpu: 0.0.40
codegen_flags: <defaults>
</compile_context>

<pallas_src>
import jax
import jax.numpy as jnp
from jax.experimental import pallas as pl
from jax.experimental.pallas import tpu as pltpu

EPS = 1e-5


def _pointcn_kernel(x_ref, vecs_ref, w1_ref, w2_ref, wsc_ref, o_ref):
    """One batch-block, channels-first: x_ref (Bt, C, P) -> o_ref (Bt, O, P)."""
    Bt, C, P = x_ref.shape
    O = o_ref.shape[1]

    vp = vecs_ref[...]      # (max(C,O), 6) f32 packed per-channel vectors:
                            #  [:,0]=bn1 scale [:,1]=bn1 shift [:,2]=conv1 bias
                            #  [:,3]=bn2 scale [:,4]=bn2 shift [:,5]=conv2+shortcut bias
    w1 = w1_ref[...]        # (O, C)  bf16
    w2 = w2_ref[...]        # (O, O)  bf16
    wsc = wsc_ref[...]      # (O, C)  bf16

    inv_p = 1.0 / P

    def in_bn_relu(v, scale, shift):
        # One-pass biased InstanceNorm stats over the point (lane) axis, with the
        # folded BatchNorm scale absorbed into the rsqrt factor and the shift
        # applied once (saves full-tensor VPU multiplies vs. the naive chain).
        s1 = jnp.sum(v, axis=-1, keepdims=True)
        s2 = jnp.sum(v * v, axis=-1, keepdims=True)
        mu = s1 * inv_p
        var = jnp.maximum(s2 * inv_p - mu * mu, 0.0)
        alpha = jax.lax.rsqrt(var + EPS) * scale
        return jnp.maximum((v - mu) * alpha + shift, 0.0)

    def body(i, carry):
        x = x_ref[i]                                              # (C, P) f32
        # ---- InstanceNorm(C) + folded BN1 + ReLU ----
        h = in_bn_relu(x, vp[:C, 0:1], vp[:C, 1:2])
        # ---- conv1 1x1: bf16 operands, f32 MXU accumulation ----
        h = jnp.dot(w1, h.astype(jnp.bfloat16),
                    preferred_element_type=jnp.float32) + vp[:O, 2:3]
        # ---- InstanceNorm(O) + folded BN2 + ReLU ----
        h = in_bn_relu(h, vp[:O, 3:4], vp[:O, 4:5])
        # ---- conv2 + shortcut as two dots (no (O+C, P) concat) + fused bias ----
        o_ref[i] = (jnp.dot(w2, h.astype(jnp.bfloat16),
                            preferred_element_type=jnp.float32)
                    + jnp.dot(wsc, x.astype(jnp.bfloat16),
                              preferred_element_type=jnp.float32)
                    + vp[:O, 5:6])
        return carry

    jax.lax.fori_loop(0, Bt, body, 0, unroll=True)


def _pick_batch_tile(B, C, P):
    """Batch elements per grid step: amortize ~0.35us/step overhead on tiny
    blocks, keep >= 2 grid steps when possible (v7x two-TensorCore balance)."""
    block_bytes = max(C * P * 4, 1)
    target = max(1, (512 * 1024) // block_bytes)
    cap = B if B < 2 else B // 2
    best = 1
    for d in range(1, min(target, cap) + 1):
        if B % d == 0:
            best = d
    return best


def pointcn_pallas(x_nchw, params):
    """x_nchw: (B, C, H, W) float32 -> (B, O, H, W). Inference-mode BN."""
    B, C, H, W = x_nchw.shape
    O = params["w1"].shape[0]
    P = H * W
    maxd = max(C, O)

    # NCHW -> (B, C, P): channels-first, pure reshape.  NO pad / slice of the
    # point axis (full-P blocks are legal even if P % 128 != 0; Mosaic masks the
    # ragged tail), so no extra HBM passes.
    x = x_nchw.reshape(B, C, P)

    # Fold inference BN into scale/shift, combine conv2+shortcut biases, and pack
    # the six per-channel vectors into a single (maxd, 6) operand.
    s1 = params["bn1_g"] * jax.lax.rsqrt(params["bn1_v"] + EPS)        # (C,)
    t1 = params["bn1_b"] - params["bn1_m"] * s1
    s2 = params["bn2_g"] * jax.lax.rsqrt(params["bn2_v"] + EPS)        # (O,)
    t2 = params["bn2_b"] - params["bn2_m"] * s2
    tail_b = params["b2"] + params["bsc"]                              # (O,)
    pad1 = lambda v: jnp.pad(v, (0, maxd - v.shape[0]))
    vecs = jnp.stack(
        [pad1(s1), pad1(t1), pad1(params["b1"]), pad1(s2), pad1(t2), pad1(tail_b)],
        axis=1,
    ).astype(jnp.float32)                                              # (maxd, 6)

    # bf16 matmul operands (native MXU path on every generation); f32 accumulation.
    w1 = params["w1"].astype(jnp.bfloat16)      # (O, C)
    w2 = params["w2"].astype(jnp.bfloat16)      # (O, O)
    wsc = params["wsc"].astype(jnp.bfloat16)    # (O, C)

    Bt = _pick_batch_tile(B, C, P)
    grid = (B // Bt,)

    # Explicit VMEM budget: double-buffered I/O blocks + resident weights + an
    # allowance for in-kernel temporaries, clamped to [32 MiB, 48 MiB] — above
    # v5e's 16 MiB default scoped limit, below v7x's 64 MiB physical VMEM.
    io_bytes = 2 * Bt * (C + O) * P * 4 * 2
    tmp_bytes = 6 * (C + O) * P * 4
    wgt_bytes = (2 * O * C + O * O) * 2 + maxd * 6 * 4
    vmem_limit = int(min(48 * 1024 * 1024,
                         max(32 * 1024 * 1024,
                             2 * (io_bytes + tmp_bytes + wgt_bytes))))

    const = lambda shape: pl.BlockSpec(shape, lambda b, _n=len(shape): (0,) * _n)

    out = pl.pallas_call(
        _pointcn_kernel,
        out_shape=jax.ShapeDtypeStruct((B, O, P), jnp.float32),
        grid_spec=pltpu.PrefetchScalarGridSpec(
            num_scalar_prefetch=0,
            grid=grid,
            in_specs=[
                pl.BlockSpec((Bt, C, P), lambda b: (b, 0, 0)),   # activations
                const((maxd, 6)),                                # packed per-channel vectors
                const((O, C)),                                   # conv1 weight (bf16)
                const((O, O)),                                   # conv2 weight (bf16)
                const((O, C)),                                   # shortcut weight (bf16)
            ],
            out_specs=pl.BlockSpec((Bt, O, P), lambda b: (b, 0, 0)),
        ),
        compiler_params=pltpu.CompilerParams(
            dimension_semantics=("parallel",),      # batch blocks are independent
            vmem_limit_bytes=vmem_limit,
        ),
    )(x, vecs, w1, w2, wsc)

    return out.reshape(B, O, H, W)


def pointcn_reference(x_nchw, params, *, bf16_matmul=False):
    """Pure-JAX reference of the PyTorch forward (inference-mode BN).

    bf16_matmul=True mirrors the kernel's precision policy (bf16 matmul operands,
    f32 accumulation) so the comparison isolates structural correctness.
    """
    B, C, H, W = x_nchw.shape
    O = params["w1"].shape[0]
    P = H * W
    x = x_nchw.reshape(B, C, P)
    cast = (lambda a: a.astype(jnp.bfloat16)) if bf16_matmul else (lambda a: a)

    def inorm(h):
        mu = jnp.mean(h, axis=2, keepdims=True)
        var = jnp.mean((h - mu) ** 2, axis=2, keepdims=True)   # biased
        return (h - mu) * jax.lax.rsqrt(var + EPS)

    def bnorm(h, g, b, m, v):
        cb = lambda a: a[None, :, None]
        return (h - cb(m)) * jax.lax.rsqrt(cb(v) + EPS) * cb(g) + cb(b)

    def mm(w, h):
        return jnp.einsum("oc,bcp->bop", cast(w), cast(h),
                          preferred_element_type=jnp.float32,
                          precision=jax.lax.Precision.HIGHEST)

    h = inorm(x)
    h = jnp.maximum(bnorm(h, params["bn1_g"], params["bn1_b"],
                          params["bn1_m"], params["bn1_v"]), 0.0)
    h = mm(params["w1"], h) + params["b1"][None, :, None]
    h = inorm(h)
    h = jnp.maximum(bnorm(h, params["bn2_g"], params["bn2_b"],
                          params["bn2_m"], params["bn2_v"]), 0.0)
    out = mm(params["w2"], h) + params["b2"][None, :, None]
    out = out + mm(params["wsc"], x) + params["bsc"][None, :, None]
    return out.reshape(B, O, H, W)


def make_params(key, channels, out_channels):
    """PyTorch-shaped parameters (conv weight (O, C); BN running stats)."""
    C, O = channels, out_channels
    ks = jax.random.split(key, 14)
    p = {
        "bn1_g": jax.random.normal(ks[0], (C,)) * 0.1 + 1.0,
        "bn1_b": jax.random.normal(ks[1], (C,)) * 0.1,
        "bn1_m": jax.random.normal(ks[2], (C,)) * 0.1,
        "bn1_v": jax.random.uniform(ks[3], (C,), minval=0.5, maxval=1.5),
        "w1": jax.random.normal(ks[4], (O, C)) * 0.2,
        "b1": jax.random.normal(ks[5], (O,)) * 0.1,
        "bn2_g": jax.random.normal(ks[6], (O,)) * 0.1 + 1.0,
        "bn2_b": jax.random.normal(ks[7], (O,)) * 0.1,
        "bn2_m": jax.random.normal(ks[8], (O,)) * 0.1,
        "bn2_v": jax.random.uniform(ks[9], (O,), minval=0.5, maxval=1.5),
        "w2": jax.random.normal(ks[10], (O, O)) * 0.2,
        "b2": jax.random.normal(ks[11], (O,)) * 0.1,
        "wsc": jax.random.normal(ks[12], (O, C)) * 0.2,
        "bsc": jax.random.normal(ks[13], (O,)) * 0.1,
    }
    return {k: v.astype(jnp.float32) for k, v in p.items()}


if __name__ == "__main__":
    key = jax.random.PRNGKey(0)

    def check(B, C, O, H, W, tag):
        kx, kp = jax.random.split(jax.random.fold_in(key, tag))
        x = jax.random.normal(kx, (B, C, H, W), dtype=jnp.float32)
        params = make_params(kp, C, O)

        out = jax.block_until_ready(pointcn_pallas(x, params))
        assert out.shape == (B, O, H, W), out.shape

        # Tight structural check vs. a reference using the same bf16-matmul policy.
        ref_bf16 = pointcn_reference(x, params, bf16_matmul=True)
        err_t = float(jnp.max(jnp.abs(out - ref_bf16)))
        assert jnp.allclose(out, ref_bf16, atol=5e-3, rtol=5e-3), err_t

        # Loose check vs. the exact-f32 reference; bounds the deliberate bf16
        # matmul-operand precision policy (review-sanctioned).
        ref_f32 = pointcn_reference(x, params, bf16_matmul=False)
        err_l = float(jnp.max(jnp.abs(out - ref_f32)))
        assert jnp.allclose(out, ref_f32, atol=5e-2, rtol=5e-2), err_l

    # P = 256 (lane-aligned), Bt = 1 -> grid=(2,): both v7x TensorCores busy.
    check(2, 4, 8, 16, 16, 0)
    # P = 100 (ragged lane tail, no wrapper pad/slice), Bt = 2 batch grouping.
    check(4, 4, 8, 10, 10, 1)

    print("KERNEL_OK")
</pallas_src>

<mosaic_0001>
module attributes {stable_mosaic.version = 11 : i64} {
  func.func @_pointcn_kernel(%arg0: i32, %arg1: memref<1x4x256xf32, #tpu.memory_space<vmem>>, %arg2: memref<8x6xf32, #tpu.memory_space<vmem>>, %arg3: memref<8x4xbf16, #tpu.memory_space<vmem>>, %arg4: memref<8x8xbf16, #tpu.memory_space<vmem>>, %arg5: memref<8x4xbf16, #tpu.memory_space<vmem>>, %arg6: memref<1x8x256xf32, #tpu.memory_space<vmem>>) attributes {dimension_semantics = [#tpu.dimension_semantics<parallel>], iteration_bounds = array<i64: 2>, scalar_prefetch = 0 : i64, scratch_operands = 0 : i64, tpu.core_type = #tpu.core_type<tc>, window_params = [{transform_indices = @transform_0, window_bounds = array<i64: 1, 4, 256>}, {pipeline_mode = #tpu.pipeline_mode<synchronous>, transform_indices = @transform_1, window_bounds = array<i64: 8, 6>}, {pipeline_mode = #tpu.pipeline_mode<synchronous>, transform_indices = @transform_2, window_bounds = array<i64: 8, 4>}, {pipeline_mode = #tpu.pipeline_mode<synchronous>, transform_indices = @transform_3, window_bounds = array<i64: 8, 8>}, {pipeline_mode = #tpu.pipeline_mode<synchronous>, transform_indices = @transform_4, window_bounds = array<i64: 8, 4>}, {transform_indices = @transform_5, window_bounds = array<i64: 1, 8, 256>}]} {
    %c0 = arith.constant 0 : index
    %c0_0 = arith.constant 0 : index
    %0 = vector.load %arg2[%c0, %c0_0] : memref<8x6xf32, #tpu.memory_space<vmem>>, vector<8x6xf32>
    %c0_1 = arith.constant 0 : index
    %c0_2 = arith.constant 0 : index
    %1 = vector.load %arg3[%c0_1, %c0_2] : memref<8x4xbf16, #tpu.memory_space<vmem>>, vector<8x4xbf16>
    %c0_3 = arith.constant 0 : index
    %c0_4 = arith.constant 0 : index
    %2 = vector.load %arg4[%c0_3, %c0_4] : memref<8x8xbf16, #tpu.memory_space<vmem>>, vector<8x8xbf16>
    %c0_5 = arith.constant 0 : index
    %c0_6 = arith.constant 0 : index
    %3 = vector.load %arg5[%c0_5, %c0_6] : memref<8x4xbf16, #tpu.memory_space<vmem>>, vector<8x4xbf16>
    %c0_i32 = arith.constant 0 : i32
    %4 = arith.index_cast %c0_i32 : i32 to index
    %c0_7 = arith.constant 0 : index
    %c0_8 = arith.constant 0 : index
    %5 = vector.load %arg1[%4, %c0_7, %c0_8] : memref<1x4x256xf32, #tpu.memory_space<vmem>>, vector<1x4x256xf32>
    %6 = vector.shape_cast %5 : vector<1x4x256xf32> to vector<4x256xf32>
    %7 = vector.extract_strided_slice %0 {offsets = [0, 0], sizes = [4, 1], strides = [1, 1]} : vector<8x6xf32> to vector<4x1xf32>
    %8 = vector.extract_strided_slice %0 {offsets = [0, 1], sizes = [4, 1], strides = [1, 1]} : vector<8x6xf32> to vector<4x1xf32>
    %cst = arith.constant dense<0.000000e+00> : vector<4xf32>
    %9 = vector.multi_reduction <add>, %6, %cst [1] : vector<4x256xf32> to vector<4xf32>
    %10 = vector.shape_cast %9 : vector<4xf32> to vector<4x1xf32>
    %11 = arith.mulf %6, %6 : vector<4x256xf32>
    %cst_9 = arith.constant dense<0.000000e+00> : vector<4xf32>
    %12 = vector.multi_reduction <add>, %11, %cst_9 [1] : vector<4x256xf32> to vector<4xf32>
    %13 = vector.shape_cast %12 : vector<4xf32> to vector<4x1xf32>
    %cst_10 = arith.constant 3.906250e-03 : f32
    %14 = vector.broadcast %cst_10 : f32 to vector<4x1xf32>
    %15 = arith.mulf %10, %14 : vector<4x1xf32>
    %cst_11 = arith.constant 3.906250e-03 : f32
    %16 = vector.broadcast %cst_11 : f32 to vector<4x1xf32>
    %17 = arith.mulf %13, %16 : vector<4x1xf32>
    %18 = arith.mulf %15, %15 : vector<4x1xf32>
    %19 = arith.subf %17, %18 : vector<4x1xf32>
    %cst_12 = arith.constant 0.000000e+00 : f32
    %20 = vector.broadcast %cst_12 : f32 to vector<4x1xf32>
    %21 = arith.maximumf %19, %20 : vector<4x1xf32>
    %cst_13 = arith.constant 9.99999974E-6 : f32
    %22 = vector.broadcast %cst_13 : f32 to vector<4x1xf32>
    %23 = arith.addf %21, %22 : vector<4x1xf32>
    %24 = math.rsqrt %23 : vector<4x1xf32>
    %25 = arith.mulf %24, %7 : vector<4x1xf32>
    %26 = vector.broadcast %15 : vector<4x1xf32> to vector<4x256xf32>
    %27 = arith.subf %6, %26 : vector<4x256xf32>
    %28 = vector.broadcast %25 : vector<4x1xf32> to vector<4x256xf32>
    %29 = arith.mulf %27, %28 : vector<4x256xf32>
    %30 = vector.broadcast %8 : vector<4x1xf32> to vector<4x256xf32>
    %31 = arith.addf %29, %30 : vector<4x256xf32>
    %cst_14 = arith.constant 0.000000e+00 : f32
    %32 = vector.broadcast %cst_14 : f32 to vector<4x256xf32>
    %33 = arith.maximumf %31, %32 : vector<4x256xf32>
    %34 = arith.truncf %33 : vector<4x256xf32> to vector<4x256xbf16>
    %cst_15 = arith.constant dense<0.000000e+00> : vector<8x256xf32>
    %35 = tpu.matmul %1, %34, %cst_15 {dimension_numbers = #tpu.dot_dimension_numbers<[1], [0], [0], [1], [0, 0, 1, 1], [], []>} : vector<8x4xbf16>, vector<4x256xbf16>, vector<8x256xf32> -> vector<8x256xf32>
    %36 = vector.extract_strided_slice %0 {offsets = [0, 2], sizes = [8, 1], strides = [1, 1]} : vector<8x6xf32> to vector<8x1xf32>
    %37 = vector.broadcast %36 : vector<8x1xf32> to vector<8x256xf32>
    %38 = arith.addf %35, %37 : vector<8x256xf32>
    %39 = vector.extract_strided_slice %0 {offsets = [0, 3], sizes = [8, 1], strides = [1, 1]} : vector<8x6xf32> to vector<8x1xf32>
    %40 = vector.extract_strided_slice %0 {offsets = [0, 4], sizes = [8, 1], strides = [1, 1]} : vector<8x6xf32> to vector<8x1xf32>
    %cst_16 = arith.constant dense<0.000000e+00> : vector<8xf32>
    %41 = vector.multi_reduction <add>, %38, %cst_16 [1] : vector<8x256xf32> to vector<8xf32>
    %42 = vector.shape_cast %41 : vector<8xf32> to vector<8x1xf32>
    %43 = arith.mulf %38, %38 : vector<8x256xf32>
    %cst_17 = arith.constant dense<0.000000e+00> : vector<8xf32>
    %44 = vector.multi_reduction <add>, %43, %cst_17 [1] : vector<8x256xf32> to vector<8xf32>
    %45 = vector.shape_cast %44 : vector<8xf32> to vector<8x1xf32>
    %cst_18 = arith.constant 3.906250e-03 : f32
    %46 = vector.broadcast %cst_18 : f32 to vector<8x1xf32>
    %47 = arith.mulf %42, %46 : vector<8x1xf32>
    %cst_19 = arith.constant 3.906250e-03 : f32
    %48 = vector.broadcast %cst_19 : f32 to vector<8x1xf32>
    %49 = arith.mulf %45, %48 : vector<8x1xf32>
    %50 = arith.mulf %47, %47 : vector<8x1xf32>
    %51 = arith.subf %49, %50 : vector<8x1xf32>
    %cst_20 = arith.constant 0.000000e+00 : f32
    %52 = vector.broadcast %cst_20 : f32 to vector<8x1xf32>
    %53 = arith.maximumf %51, %52 : vector<8x1xf32>
    %cst_21 = arith.constant 9.99999974E-6 : f32
    %54 = vector.broadcast %cst_21 : f32 to vector<8x1xf32>
    %55 = arith.addf %53, %54 : vector<8x1xf32>
    %56 = math.rsqrt %55 : vector<8x1xf32>
    %57 = arith.mulf %56, %39 : vector<8x1xf32>
    %58 = vector.broadcast %47 : vector<8x1xf32> to vector<8x256xf32>
    %59 = arith.subf %38, %58 : vector<8x256xf32>
    %60 = vector.broadcast %57 : vector<8x1xf32> to vector<8x256xf32>
    %61 = arith.mulf %59, %60 : vector<8x256xf32>
    %62 = vector.broadcast %40 : vector<8x1xf32> to vector<8x256xf32>
    %63 = arith.addf %61, %62 : vector<8x256xf32>
    %cst_22 = arith.constant 0.000000e+00 : f32
    %64 = vector.broadcast %cst_22 : f32 to vector<8x256xf32>
    %65 = arith.maximumf %63, %64 : vector<8x256xf32>
    %66 = arith.truncf %65 : vector<8x256xf32> to vector<8x256xbf16>
    %cst_23 = arith.constant dense<0.000000e+00> : vector<8x256xf32>
    %67 = tpu.matmul %2, %66, %cst_23 {dimension_numbers = #tpu.dot_dimension_numbers<[1], [0], [0], [1], [0, 0, 1, 1], [], []>} : vector<8x8xbf16>, vector<8x256xbf16>, vector<8x256xf32> -> vector<8x256xf32>
    %68 = arith.truncf %6 : vector<4x256xf32> to vector<4x256xbf16>
    %cst_24 = arith.constant dense<0.000000e+00> : vector<8x256xf32>
    %69 = tpu.matmul %3, %68, %cst_24 {dimension_numbers = #tpu.dot_dimension_numbers<[1], [0], [0], [1], [0, 0, 1, 1], [], []>} : vector<8x4xbf16>, vector<4x256xbf16>, vector<8x256xf32> -> vector<8x256xf32>
    %70 = arith.addf %67, %69 : vector<8x256xf32>
    %71 = vector.extract_strided_slice %0 {offsets = [0, 5], sizes = [8, 1], strides = [1, 1]} : vector<8x6xf32> to vector<8x1xf32>
    %72 = vector.broadcast %71 : vector<8x1xf32> to vector<8x256xf32>
    %73 = arith.addf %70, %72 : vector<8x256xf32>
    %74 = arith.index_cast %c0_i32 : i32 to index
    %c0_25 = arith.constant 0 : index
    %c0_26 = arith.constant 0 : index
    %75 = vector.load %arg6[%74, %c0_25, %c0_26] : memref<1x8x256xf32, #tpu.memory_space<vmem>>, vector<1x8x256xf32>
    %76 = vector.shape_cast %75 : vector<1x8x256xf32> to vector<8x256xf32>
    %77 = vector.shape_cast %73 : vector<8x256xf32> to vector<1x8x256xf32>
    tpu.vector_store %arg6[%74, %c0_25, %c0_26], %77 {strides = array<i32>} : memref<1x8x256xf32, #tpu.memory_space<vmem>>, vector<1x8x256xf32>,
    %c1_i32 = arith.constant 1 : i32
    return
  }
  func.func @transform_0(%arg0: i32) -> (i32, i32, i32) {
    %c0_i32 = arith.constant 0 : i32
    %c0_i32_0 = arith.constant 0 : i32
    %c0_i32_1 = arith.constant 0 : i32
    return %arg0, %c0_i32, %c0_i32_0 : i32, i32, i32
  }
  func.func @transform_1(%arg0: i32) -> (i32, i32) {
    %c0_i32 = arith.constant 0 : i32
    %c0_i32_0 = arith.constant 0 : i32
    %c0_i32_1 = arith.constant 0 : i32
    return %c0_i32, %c0_i32_0 : i32, i32
  }
  func.func @transform_2(%arg0: i32) -> (i32, i32) {
    %c0_i32 = arith.constant 0 : i32
    %c0_i32_0 = arith.constant 0 : i32
    %c0_i32_1 = arith.constant 0 : i32
    return %c0_i32, %c0_i32_0 : i32, i32
  }
  func.func @transform_3(%arg0: i32) -> (i32, i32) {
    %c0_i32 = arith.constant 0 : i32
    %c0_i32_0 = arith.constant 0 : i32
    %c0_i32_1 = arith.constant 0 : i32
    return %c0_i32, %c0_i32_0 : i32, i32
  }
  func.func @transform_4(%arg0: i32) -> (i32, i32) {
    %c0_i32 = arith.constant 0 : i32
    %c0_i32_0 = arith.constant 0 : i32
    %c0_i32_1 = arith.constant 0 : i32
    return %c0_i32, %c0_i32_0 : i32, i32
  }
  func.func @transform_5(%arg0: i32) -> (i32, i32, i32) {
    %c0_i32 = arith.constant 0 : i32
    %c0_i32_0 = arith.constant 0 : i32
    %c0_i32_1 = arith.constant 0 : i32
    return %arg0, %c0_i32, %c0_i32_0 : i32, i32, i32
  }
}

</mosaic_0001>

<bundles_post_ra>
// kernel: tpu_custom_call.1
= control target key start
LH: loop header
LB: loop body
LE: loop exit
PB: predicated region body
PF: predicated region fallthrough
CT: control target
= control target key end

     0   :  { %10 = vsyncpa [#allocation3], 0  ;;  %s1034_s0 = inlined_call_operand.hbm [shape: f32[2,4,256], index: 0, kind: input, shape index: {}]   ;;  %s1035_s1 = inlined_call_operand.vmem [shape: f32[8,6], index: 1, kind: input, shape index: {}]   ;;  %s1036_s2 = inlined_call_operand.vmem [shape: bf16[8,4], index: 2, kind: input, shape index: {}]   ;;  %s1037_s3 = inlined_call_operand.vmem [shape: bf16[8,8], index: 3, kind: input, shape index: {}]   ;;  %s1038_s4 = inlined_call_operand.vmem [shape: bf16[8,4], index: 4, kind: input, shape index: {}]   ;;  %s1039_s5 = inlined_call_operand.hbm [shape: f32[2,8,256], index: 5, kind: output, shape index: {}]  }
   0x1   :  { %12 = vsyncpa [#allocation3 + $0x1], 0 }
   0x2   :  { %13 = vsyncpa [#allocation4], 0 }
   0x3   :  { %15 = vsyncpa [#allocation4 + $0x1], 0  ;;  %s825_s18 = smov 0   ;;  %s827_s19 = smov 0  }
   0x4   :  { %s829_s20 = smov 0   ;;  %s831_s21 = smov 0  }
   0x5 LB: > { %s846_s22 = sadd.s32 4294967295, %s784_s21   ;;  %s602_s23 = sadd.s32 4294967294, %s784_s21   ;;  %s784_s21 = sphi %s831_s21, %s1054_s21   ;;  %s780_s20 = sphi %s829_s20, %s1053_s20   ;;  %s776_s19 = sphi %s827_s19, %s1052_s19   ;;  %s772_s18 = sphi %s825_s18, %s1051_s18  }
   0x6   : > { %s850_s24 = sadd.s32 1, %s784_s21   ;;  %s28_s25 = sadd.s32 1, %s780_s20 }
   0x7   : > { %s25_s26 = ssub.s32 %s784_s21, %s850_s24  ;;  %p35_p0 = scmp.ne.s32.totalorder %s780_s20, %s776_s19 }
   0x8   : > { %p26_p1 = scmp.eq.s32.totalorder %s25_s26, 0  ;;  %p36_p2 = scmp.eq.s32.totalorder %s784_s21, 0 }
   0x9   : > { %p41_p3 = scmp.ne.s32.totalorder %s776_s19, %s772_s18  ;;  %p42_p4 = scmp.eq.s32.totalorder %s846_s22, 0 }
   0xa   : > { %s862_s27 = scalar_select %p26_p1, %s780_s20, %s28_s25  }
   0xb   : > { %p864_p5 = por %p36_p2, %p35_p0  ;;  %p868_p6 = por %p42_p4, %p41_p3 }
   0xc   : > { %p149_p7 = scmp.eq.s32.totalorder %s846_s22, 1  ;;  %p155_p8 = scmp.eq.s32.totalorder %s602_s23, 1 }
   0xd   : > { %p636_p10 = scmp.lt.s32.totalorder %s784_s21, 2  ;;  %s187_s7 = sand.u32 1, %s780_s20  }
   0xe   : > { %p875_p11 = por %p149_p7, %p35_p0  ;;  %p879_p12 = por %p155_p8, %p41_p3 }
   0xf   : > { %s622_s8 = sshll.u32 %s784_s21, 7  ;;  %s605_s9 = sshll.u32 %s187_s7, 3 }
  0x10   : > { %s1043_s30 = scalar_select %p875_p11, 1, 0 }
  0x11   : > { %s1044_s6 = scalar_select %p879_p12, 1, 0 }
  0x12   : > { %s888_s12 = scalar_lea.hbm %s1034_s0, %s622_s8  ;;  %s191_s13 = scalar_lea.vmem [#allocation2], %s605_s9 }
  0x13   : > { %s199_s14 = sshll.u32 %s191_s13, 4  ;;  %p892_p13 = pnand %p636_p10, %p864_p5  ;;  %s896_s14 = int_to_ptr.vmem [resolvable:$true] %s199_s14 }
  0x14   : > { %s188_s16 = scalar_lea.sflag [#allocation3], %s187_s7  ;;  %s688_s17 = scalar_lea.hbm %s888_s12, 128 }
  0x15   : > { %p689_p2 = scmp.ne.s32.totalorder %s888_s12, %s688_s17  ;;  %p690_p3 = pneg %p892_p13 }
  0x16   : > { %s693_s26 = scalar_lea.hbm %s1034_s0, 256  ;;  %p694_p5 = scmp.lt.u32.totalorder %s888_s12, %s1034_s0 }
  0x17   : > { %p691_p4 = pnand %p690_p3, %p689_p2  ;;  %p695_p8 = scmp.lt.u32.totalorder %s693_s26, %s688_s17 }
  0x18   : > { %p697_p9 = scmp.lt.u32.totalorder %s688_s17, %s888_s12 }
  0x19   : > { %p692_p7 = pneg %p691_p4  ;;  %p696_p10 = por %p695_p8, %p694_p5 }
  0x1b   : > { %p698_p0 = por %p697_p9, %p696_p10 }
  0x1d   : > { %p699_p1 = pnand %p698_p0, %p692_p7 }
  0x1f   : > { %702 = shalt.err (!%p699_p1)
}
  0x20   : > { %s703_s7 = scalar_lea.vmem %s896_s14, 128  ;;  %s786_s9 = smov [#allocation2]  }
  0x21   : > { %p704_p2 = scmp.ne.s32.totalorder %s896_s14, %s703_s7  ;;  %s708_s10 = sshll.u32 %s786_s9, 4  ;;  %s709_s10 = int_to_ptr.vmem [resolvable:$false] %s708_s10 }
  0x22   : > { %s710_s11 = scalar_lea.vmem %s709_s10, 256  ;;  %p711_p11 = scmp.lt.s32.totalorder %s896_s14, %s709_s10 }
  0x23   : > { %p706_p4 = pnand %p704_p2, %p690_p3  ;;  %p712_p5 = scmp.lt.s32.totalorder %s710_s11, %s703_s7 }
  0x25   : > { %p707_p12 = pneg %p706_p4  ;;  %p713_p8 = por %p712_p5, %p711_p11 }
  0x27   : > { %p714_p9 = pnand %p713_p8, %p707_p12 }
  0x29   : > { %717 = shalt.err (!%p714_p9)
}
  0x2a   : > { %631 = dma.hbm_to_vmem [thread:$0]  (!%p892_p13), %s888_s12, 128, %s896_s14, %s188_s16  }
  0x2b   : > { %p1046_p0 = scmp.lt.s32.totalorder %s784_s21, 3  ;;  %p1047_p1 = scmp.ge.s32.totalorder %s784_s21, 1 }
  0x2d   : > { %p205_p3 = pnand %p1047_p1, %p1046_p0 }
  0x2e   : > { %s930_s13 = sand.u32 (!%p205_p3), 1, %s776_s19  }
  0x2f   : > { %208 = sbr.rel (%p205_p3) target bundleno = 1130 (0x46a), region = 40  ;;  %s609_s17 = sshll.u32 (!%p205_p3), %s930_s13, 3 }
  0x30   : > { %s211_s23 = scalar_lea.sflag (!%p205_p3), [#allocation3], %s930_s13  ;;  %s214_s25 = scalar_lea.vmem (!%p205_p3), [#allocation2], %s609_s17 }
  0x36   : > { %763 = dma.done.wait (%p868_p6), %s211_s23, 128  }
  0x37   : > { %765 = vsyncadd (%p868_p6), %s211_s23, 4294967168  ;;  %vm250_vm0 = vcmask 1043456   ;;  %v938_v0 = vld [vmem:[%s214_s25] sm:$0xff]  ;;  %v787_v10 = vmov 0   ;;  %v788_v22 = vmov 1   ;;  %v789_v23 = vmov 2  }
  0x38   : > { %v942_v1 = vcombine.high %v938_v0, %v938_v0  ;;  %v251_v2 = vsel %vm250_vm0, %v938_v0, 0.0  ;;  %v256_v3 = vmul.f32 %v938_v0, %v938_v0  ;;  %677 = vset.pattern.permute.xlu1 %v787_v10  ;;  %362 = vmatprep.mubr.bf16.mxu0 %v787_v10  ;;  %v955_v19 = vld [vmem:[%s1035_s1] sm:$0xff]  ;;  %v790_v24 = vmov 839922192   ;;  %s610_s7 = sshll.u32 %s930_s13, 4  ;;  %s623_s9 = sshll.u32 %s846_s22, 8 }
  0x39   : > { %449 = vmatprep.mubr.bf16.mxu1 %v787_v10  ;;  %679 = vset.pattern.permute.xlu0 %v789_v23  ;;  %v275_v25 = vunpack.c.l.s4 %v790_v24  ;;  %v277_v26 = vlaneseq  ;;  %vm323_vm1 = vcmask 1041408   ;;  %v243_v43 = vld [vmem:[%s1036_s2] sm:$0xf]  ;;  %vm319_vm2 = vcmask 31744   ;;  %s240_s10 = scalar_lea.vmem [#allocation5], %s610_s7  ;;  %s990_s25 = scalar_lea.hbm %s1039_s5, %s623_s9 }
  0x3a   : > { %v252_v4 = vsel %vm250_vm0, %v942_v1, 0.0  ;;  %v258_v5 = vcombine.high %v256_v3, %v256_v3  ;;  %v260_v6 = vsel %vm250_vm0, %v256_v3, 0.0  ;;  %v791_v55 = vmov 3   ;;  %s532_s11 = sshll.u32 %s240_s10, 4  ;;  %s518_s22 = scalar_lea.sflag [#allocation4], %s930_s13  ;;  %s992_s11 = int_to_ptr.vmem [resolvable:$true] %s532_s11 }
  0x3b   : > { %v253_v7 = vadd.f32 %v252_v4, %v251_v2  ;;  %v276_v27 = vunpack.c.0.s8 %v275_v25  ;;  %v278_v28 = vshrl.u32 %v277_v26, 7  ;;  %v792_v56 = vmov 4   ;;  %s718_s29 = scalar_lea.vmem %s992_s11, 256  ;;  %p1048_p11 = scmp.ne.s32.totalorder %s1043_s30, 0 }
  0x3c   : > { %v261_v8 = vsel %vm250_vm0, %v258_v5, 0.0  ;;  %v407_v5 = vpack.c.bf16 %v942_v1, %v942_v1  ;;  %vm458_vm3 = vcmask 64512   ;;  %p719_p6 = scmp.ne.s32.totalorder %s992_s11, %s718_s29  ;;  %s794_s12 = smov [#allocation5]  }
  0x3d   : > { %254 = vadd.xlane.f32.xlu0 %v253_v7  ;;  %v262_v9 = vadd.f32 %v261_v8, %v260_v6  ;;  %v279_v29 = vsub.s32 %v276_v27, %v278_v28  ;;  %v406_v6 = vpack.c.bf16 %v938_v0, %v938_v0  ;;  %v245_v8 = vld [vmem:[%s1038_s4] sm:$0xf]  ;;  %s722_s14 = sshll.u32 %s794_s12, 4  ;;  %s723_s14 = int_to_ptr.vmem [resolvable:$false] %s722_s14 }
  0x3e   : > { %613 = vmatprep.subr.msk.bf16.mxu1 %vm323_vm1, %v407_v5  ;;  %p720_p12 = pnand %p719_p6, %p1048_p11  ;;  %s724_s15 = scalar_lea.vmem %s723_s14, 512 }
  0x3f   : > { %v412_v7 = vsel %vm323_vm1, %v406_v6, 0  ;;  %p725_p7 = scmp.lt.s32.totalorder %s992_s11, %s723_s14  ;;  %p726_p10 = scmp.lt.s32.totalorder %s724_s15, %s718_s29 }
  0x40   : > { %418 = vmatpush1.bf16.msra.mxu1 %v412_v7  ;;  %p721_p13 = pneg %p720_p12 }
  0x41   : > { %263 = vadd.xlane.f32.xlu0 %v262_v9  ;;  %v793_v9 = vmov 5   ;;  %p727_p2 = por %p726_p10, %p725_p7 }
  0x43   : > { %614 = vmatmul.mubr.msk.bf16.vlgmr.msra.gmra.mrb[0].mxu1 %vm319_vm2, %v245_v8  ;;  %p728_p4 = pnand %p727_p2, %p721_p13 }
  0x57   : > { %316 = vperm.xlu0 %679, %v955_v19  }
  0x5b   : > { %681 = vset.pattern.permute.xlu0 %v792_v56 }
  0x5c   : > { %397 = vperm.xlu0 %681, %v955_v19  }
  0x60   : > { %682 = vset.pattern.permute.xlu0 %v793_v9 }
  0x61   : > { %510 = vperm.xlu0 %682, %v955_v19  }
  0xca   : > { %v255_v11 = vpop.xlane.xlu0 %254 }
  0xcb   : > { %v265_v12 = vmul.f32 0.00390625, %v255_v11 }
  0xcd   : > { %v267_v14 = vmul.f32 %v265_v12, %v265_v12  ;;  %v280_v30 = vrot.slane %v265_v12, %v279_v29 }
  0xce   : > { %v264_v13 = vpop.xlane.xlu0 %263 }
  0xcf   : > { %v266_v15 = vmul.f32 0.00390625, %v264_v13  ;;  %v282_v33 = vsub.f32 %v938_v0, %v280_v30 }
  0xd1   : > { %v268_v16 = vsub.f32 %v266_v15, %v267_v14 }
  0xd3   : > { %v269_v17 = vmax.f32 %v268_v16, 0.0 }
  0xd5   : > { %v270_v18 = vadd.f32 1e-05, %v269_v17 }
  0xd6   : > { %v317_v44 = vpop.permute.xlu0 %316 }
  0xd7   : > { %684 = vrsqrt.f32 %v270_v18 }
  0xdb   : > { %v398_v12 = vpop.permute.xlu0 %397 }
  0xe0   : > { %v511_v27 = vpop.permute.xlu0 %510 }
  0xe1   : > { %v685_v20 = vpop.eup %684 }
  0xe2   : > { %v272_v21 = vmul.f32 %v685_v20, %v955_v19 }
  0xe4   : > { %285 = vperm.xlu1 %677, %v272_v21  }
  0xe8   : > { %678 = vset.pattern.permute.xlu1 %v788_v22 }
  0xe9   : > { %298 = vperm.xlu1 %678, %v955_v19  }
  0xed   : > { %680 = vset.pattern.permute.xlu1 %v791_v55 }
 0x116   : > { %v451_v22 = vpop.f32.mrb[0].mxu1 }
 0x117   : > { %v453_v23 = vpop.f32.mrb[1].mxu1 }
 0x118   : > { %v455_v24 = vpop.f32.mrb[2].mxu1 }
 0x119   : > { %v456_v25 = vpop.f32.mrb[3].mxu1 }
 0x163   : > { %v286_v31 = vpop.permute.xlu1 %285 }
 0x164   : > { %v293_v32 = vrot.slane %v286_v31, %v279_v29 }
 0x166   : > { %v295_v35 = vmul.f32 %v293_v32, %v282_v33 }
 0x168   : > { %v299_v34 = vpop.permute.xlu1 %298 }
 0x169   : > { %v306_v36 = vrot.slane %v299_v34, %v279_v29 }
 0x16b   : > { %v308_v37 = vadd.f32 %v306_v36, %v295_v35 }
 0x16d   : > { %v309_v38 = vmax.f32 %v308_v37, 0.0 }
 0x16f   : > { %v311_v39 = vcombine.high %v309_v38, %v309_v38  ;;  %v313_v40 = vpack.c.bf16 %v309_v38, %v309_v38 }
 0x171   : > { %v314_v41 = vpack.c.bf16 %v311_v39, %v311_v39  ;;  %v325_v42 = vsel %vm323_vm1, %v313_v40, 0 }
 0x173   : > { %611 = vmatprep.subr.msk.bf16.mxu0 %vm323_vm1, %v314_v41 }
 0x174   : > { %331 = vmatpush1.bf16.msra.mxu0 %v325_v42 }
 0x177   : > { %612 = vmatmul.mubr.msk.bf16.vlgmr.msra.gmra.mrb[0].mxu0 %vm319_vm2, %v243_v43 }
 0x178   : > { %500 = vmatprep.mubr.bf16.mxu0 %v787_v10 }
 0x24a   : > { %v364_v45 = vpop.f32.mrb[0].mxu0 }
 0x24b   : > { %v365_v46 = vadd.f32 %v364_v45, %v317_v44  ;;  %v366_v47 = vpop.f32.mrb[1].mxu0 }
 0x24c   : > { %v367_v48 = vadd.f32 %v366_v47, %v317_v44  ;;  %v368_v49 = vpop.f32.mrb[2].mxu0 }
 0x24d   : > { %v369_v50 = vpop.f32.mrb[3].mxu0  ;;  %v374_v52 = vmul.f32 %v365_v46, %v365_v46 }
 0x24e   : > { %v371_v51 = vadd.f32 %v367_v48, %v365_v46  ;;  %v375_v53 = vmul.f32 %v367_v48, %v367_v48 }
 0x250   : > { %372 = vadd.xlane.f32.xlu1 %v371_v51  ;;  %v376_v54 = vadd.f32 %v375_v53, %v374_v52 }
 0x254   : > { %377 = vadd.xlane.f32.xlu1 %v376_v54 }
 0x2dd   : > { %v373_v57 = vpop.xlane.xlu1 %372 }
 0x2de   : > { %v379_v58 = vmul.f32 0.00390625, %v373_v57 }
 0x2e0   : > { %v381_v60 = vmul.f32 %v379_v58, %v379_v58  ;;  %v387_v10 = vsub.f32 %v365_v46, %v379_v58  ;;  %v388_v1 = vsub.f32 %v367_v48, %v379_v58 }
 0x2e1   : > { %v378_v59 = vpop.xlane.xlu1 %377 }
 0x2e2   : > { %v380_v61 = vmul.f32 0.00390625, %v378_v59 }
 0x2e4   : > { %v382_v62 = vsub.f32 %v380_v61, %v381_v60 }
 0x2e6   : > { %v383_v63 = vmax.f32 %v382_v62, 0.0 }
 0x2e8   : > { %v384_v2 = vadd.f32 1e-05, %v383_v63 }
 0x2ea   : > { %686 = vrsqrt.f32 %v384_v2 }
 0x2f4   : > { %v687_v3 = vpop.eup %686 }
 0x2f5   : > { %v386_v4 = vmul.f32 %v687_v3, %v955_v19  ;;  %v244_v19 = vld [vmem:[%s1037_s3] sm:$0xf] }
 0x2f7   : > { %391 = vperm.xlu1 %680, %v386_v4  }
 0x376   : > { %v392_v11 = vpop.permute.xlu1 %391 }
 0x377   : > { %v394_v0 = vmul.f32 %v392_v11, %v387_v10  ;;  %v395_v13 = vmul.f32 %v392_v11, %v388_v1 }
 0x379   : > { %v400_v14 = vadd.f32 %v398_v12, %v394_v0  ;;  %v401_v15 = vadd.f32 %v398_v12, %v395_v13 }
 0x37b   : > { %v402_v16 = vmax.f32 %v400_v14, 0.0  ;;  %v403_v17 = vmax.f32 %v401_v15, 0.0 }
 0x37d   : > { %v404_v18 = vpack.c.bf16 %v402_v16, %v402_v16  ;;  %v405_v20 = vpack.c.bf16 %v403_v17, %v403_v17 }
 0x37f   : > { %615 = vmatprep.subr.msk.bf16.mxu0 %vm250_vm0, %v405_v20  ;;  %v463_v21 = vsel %vm250_vm0, %v404_v18, 0 }
 0x380   : > { %469 = vmatpush1.bf16.msra.mxu0 %v463_v21 }
 0x383   : > { %616 = vmatmul.mubr.msk.bf16.vlgmr.msra.gmra.mrb[4].mxu0 %vm458_vm3, %v244_v19 }
 0x456   : > { %v502_v26 = vpop.f32.mrb[4].mxu0 }
 0x457   : > { %v503_v28 = vadd.f32 %v502_v26, %v451_v22  ;;  %v504_v29 = vpop.f32.mrb[5].mxu0 }
 0x458   : > { %v505_v30 = vadd.f32 %v504_v29, %v453_v23  ;;  %v506_v31 = vpop.f32.mrb[6].mxu0 }
 0x459   : > { %v507_v32 = vpop.f32.mrb[7].mxu0  ;;  %v513_v33 = vadd.f32 %v511_v27, %v503_v28 }
 0x45a   : > { %v514_v34 = vadd.f32 %v511_v27, %v505_v30 }
 0x45b   : > { %515 = vst [vmem:[%s240_s10] sm:$0xff] %v513_v33 }
 0x45c   : > { %516 = vst [vmem:[%s240_s10 + $0x8] sm:$0xff] %v514_v34 }
 0x45d   : > { %731 = shalt.err (!%p728_p4)
}
 0x45e   : > { %s732_s13 = scalar_lea.hbm %s990_s25, 256  ;;  %s736_s28 = scalar_lea.hbm %s1039_s5, 512 }
 0x45f   : > { %p733_p5 = scmp.ne.s32.totalorder %s990_s25, %s732_s13  ;;  %p737_p0 = scmp.lt.u32.totalorder %s990_s25, %s1039_s5 }
 0x460   : > { %p738_p1 = scmp.lt.u32.totalorder %s736_s28, %s732_s13  ;;  %p740_p6 = scmp.lt.u32.totalorder %s732_s13, %s990_s25 }
 0x461   : > { %p734_p8 = pnand %p733_p5, %p1048_p11 }
 0x462   : > { %p739_p3 = por %p738_p1, %p737_p0 }
 0x463   : > { %p735_p9 = pneg %p734_p8 }
 0x464   : > { %p741_p12 = por %p740_p6, %p739_p3 }
 0x466   : > { %p742_p13 = pnand %p741_p12, %p735_p9 }
 0x468   : > { %745 = shalt.err (!%p742_p13)
}
 0x469   : > { %626 = dma.vmem_to_hbm [thread:$0]  (%p1048_p11), %s992_s11, 256, %s990_s25, %s518_s22  }
 0x46a PF: > { %s544_s9 = sand.u32 1, %s772_s18   ;;  %p1049_p7 = scmp.ne.s32.totalorder %s1044_s6, 0 }
 0x46b   : > { %p1050_p10 = scmp.ge.s32.totalorder %s784_s21, 2  ;;  %s545_s10 = scalar_lea.sflag [#allocation4], %s544_s9 }
 0x46d   : > { %p633_p2 = pnand %p1050_p10, %p1049_p7 }
 0x46f   : > { %767 = dma.done.wait (!%p633_p2), %s545_s10, 256  }
 0x470   : > { %769 = vsyncadd (!%p633_p2), %s545_s10, 4294967040  ;;  %p18_p4 = scmp.ge.s32.totalorder %s850_s24, 4   ;;  %s1051_s18 = smov %s776_s19 }
 0x471   : > { %s1052_s19 = smov %s780_s20  ;;  %s1053_s20 = smov %s862_s27 }
 0x472   : > { %s1054_s21 = smov %s850_s24  ;;  %20 = sbr.rel (!%p18_p4) target bundleno = 5 (0x5), region = 85 }
 0x479   :  { %550 = vsyncpa [#allocation3], 1 }
 0x47a   :  { %552 = vsyncpa [#allocation3 + $0x1], 1 }
 0x47b   :  { %553 = vsyncpa [#allocation4], 1 }
 0x47c   :  { %555 = vsyncpa [#allocation4 + $0x1], 1 }

</bundles_post_ra>
